<compile_context>
chip_gen: v5e
topology: v5e:2x2
jax: 0.10.0
libtpu: 0.0.40
codegen_flags: <defaults>
</compile_context>

<pallas_src>
import functools

import jax
import jax.numpy as jnp
import numpy as np
from jax.experimental import pallas as pl
from jax.experimental.pallas import tpu as pltpu

EPS = 1e-6


def _round_up(x, m):
    return ((x + m - 1) // m) * m


def _cdiv(a, b):
    return -(-a // b)


def _layernorm_kernel(x_ref, alpha_ref, beta_ref, o_ref, *, d_real, d_pad):
    # x_ref: (tile_rows, d_pad); alpha_ref/beta_ref: (1, d_pad). Padded lanes = 0.
    x = x_ref[...]
    if x.dtype != jnp.float32:
        x = x.astype(jnp.float32)  # f32 reductions for bf16 callers

    # First pass: row sums (padded lanes are zero, so this is exact over d_real).
    row_sum = jnp.sum(x, axis=-1, keepdims=True)           # x.sum(-1, keepdim=True)
    mean = row_sum * (1.0 / d_real)

    # Second pass: two-pass (mean-subtracted) unbiased variance, ddof=1.
    centered = x - mean
    if d_real != d_pad:
        lane = jax.lax.broadcasted_iota(jnp.int32, centered.shape, 1)
        centered = jnp.where(lane < d_real, centered, 0.0)
    ddof_den = max(d_real - 1, 1)  # TODO(synk): torch returns NaN for d==1 (0/0)
    var = jnp.sum(centered * centered, axis=-1, keepdims=True) * (1.0 / ddof_den)
    std = jnp.sqrt(var)                                     # x.std(-1, keepdim=True)

    # Reciprocal on the EUP + one Newton-Raphson step (avoids a tile-wide
    # vector divide on the VPU; full f32 accuracy after the refinement).
    denom = std + EPS
    inv = pl.reciprocal(denom, approx=True)
    inv = inv * (2.0 - denom * inv)

    # NOTE: subtract row_sum (the reference's sum-vs-mean quirk), not the mean.
    out = alpha_ref[...] * ((x - row_sum) * inv) + beta_ref[...]
    o_ref[...] = out.astype(o_ref.dtype)


def _vmem_budgets():
    """Generation-aware (resident-tile budget, vmem_limit_bytes)."""
    vmem_cap = None
    try:
        info = pltpu.get_tpu_info()
        for attr in ("vmem_capacity_bytes", "vmem_size_bytes", "vmem_bytes"):
            vmem_cap = getattr(info, attr, None)
            if vmem_cap:
                break
    except Exception:
        vmem_cap = None
    if not vmem_cap:
        vmem_cap = 64 << 20  # unknown chip: assume the smallest (v7x-like)
    if vmem_cap <= (64 << 20):
        # v7x: 64 MiB per TensorCore -> leave headroom for Mosaic scratch.
        return 20 << 20, 44 << 20
    # v5e / v6e: 128 MiB physical VMEM.
    return 56 << 20, 96 << 20


def _choose_tiling(rows, d_pad, itemsize, tile_budget_bytes):
    """Pick (tile_rows, rows_pad, n_tiles) by bytes, minimizing row padding."""
    rows8 = max(8, _round_up(rows, 8))
    # Resident bytes per row: double-buffered input + double-buffered output
    # tiles at the array dtype, plus f32 compute intermediates (x, centered).
    per_row_bytes = d_pad * (4 * itemsize + 8)
    cap = tile_budget_bytes // per_row_bytes
    cap = max(8, (cap // 8) * 8)

    # Guarantee >= 2 tiles when possible so the "parallel" grid axis can be
    # sharded across both TensorCores on v7x.
    min_tiles = 2 if rows8 >= 16 else 1
    n_tiles = max(_cdiv(rows8, cap), min_tiles)

    # Prefer an n_tiles nearby that divides rows8 into exact multiples of 8:
    # avoids any row over-padding (and the padded copy when d is aligned).
    chosen = None
    hi = min(2 * n_tiles, rows8 // 8)
    for n in range(n_tiles, hi + 1):
        if rows8 % n == 0 and (rows8 // n) % 8 == 0:
            chosen = n
            break
    if chosen is not None:
        n_tiles = chosen
        tile_rows = rows8 // n_tiles
    else:
        tile_rows = _round_up(_cdiv(rows8, n_tiles), 8)
    rows_pad = n_tiles * tile_rows
    return tile_rows, rows_pad, n_tiles


def pallas_layernorm(x2d, alpha, beta):
    """x2d: (rows, D); alpha/beta: (D,). Returns (rows, D) in x2d.dtype."""
    rows, d = x2d.shape
    itemsize = jnp.dtype(x2d.dtype).itemsize
    d_pad = _round_up(d, 128)

    tile_budget, vmem_limit = _vmem_budgets()
    tile_rows, rows_pad, n_tiles = _choose_tiling(rows, d_pad, itemsize, tile_budget)

    # Padded copy only when actually required (rows%8!=0, non-dividing tile,
    # or D not a multiple of 128). Zeros keep the reductions exact.
    needs_pad = (rows_pad, d_pad) != (rows, d)
    if needs_pad:
        xp = jnp.pad(x2d, ((0, rows_pad - rows), (0, d_pad - d)))
    else:
        xp = x2d
    alpha_p = jnp.zeros((1, d_pad), jnp.float32).at[0, :d].set(
        alpha.astype(jnp.float32))
    beta_p = jnp.zeros((1, d_pad), jnp.float32).at[0, :d].set(
        beta.astype(jnp.float32))

    cost = pl.CostEstimate(
        flops=int(9 * rows_pad * d_pad),
        transcendentals=int(2 * rows_pad),
        bytes_accessed=int(2 * rows_pad * d_pad * itemsize + 2 * d_pad * 4),
    )

    out_pad = pl.pallas_call(
        functools.partial(_layernorm_kernel, d_real=d, d_pad=d_pad),
        out_shape=jax.ShapeDtypeStruct((rows_pad, d_pad), x2d.dtype),
        grid_spec=pltpu.PrefetchScalarGridSpec(
            num_scalar_prefetch=0,
            grid=(n_tiles,),
            in_specs=[
                pl.BlockSpec((tile_rows, d_pad), lambda i: (i, 0)),
                pl.BlockSpec((1, d_pad), lambda i: (0, 0)),
                pl.BlockSpec((1, d_pad), lambda i: (0, 0)),
            ],
            out_specs=pl.BlockSpec((tile_rows, d_pad), lambda i: (i, 0)),
        ),
        compiler_params=pltpu.CompilerParams(
            dimension_semantics=("parallel",),
            vmem_limit_bytes=vmem_limit,
        ),
        cost_estimate=cost,
    )(xp, alpha_p, beta_p)

    if needs_pad:
        out_pad = out_pad[:rows, :d]
    return out_pad


class Decoder:
    """JAX/Pallas port of the reference Decoder."""

    def __init__(self, model_dim, n):
        # TODO(synk): decoder_layer class is not provided in the reference
        # source; the n cloned layers are applied as identity maps here.
        self.n = n
        self.model_dim = model_dim
        self.alpha = jnp.ones((model_dim,), jnp.float32)
        self.beta = jnp.zeros((model_dim,), jnp.float32)

    def __call__(self, x, memory, src_mask, tgt_mask):
        for _ in range(self.n):
            x = x  # identity (see TODO above)
        b, s, d = x.shape
        x2d = x.reshape(b * s, d)
        out2d = pallas_layernorm(x2d, self.alpha, self.beta)
        return out2d.reshape(b, s, d)


def _reference_layernorm(x, alpha, beta, eps=EPS):
    # Pure-numpy mirror of the torch LayerNorm (with its sum-vs-mean quirk).
    x = np.asarray(x, np.float64)
    row_sum = x.sum(-1, keepdims=True)
    std = x.std(-1, ddof=1, keepdims=True)
    return alpha * (x - row_sum) / (std + eps) + beta


if __name__ == "__main__":
    key = jax.random.PRNGKey(0)

    # Main test: shapes consistent with the module.
    batch, seq, model_dim, n_layers = 2, 8, 32, 2
    kx, km, kq = jax.random.split(key, 3)
    x = jax.random.normal(kx, (batch, seq, model_dim), jnp.float32)
    memory = jax.random.normal(km, (batch, seq, model_dim), jnp.float32)
    src_mask = jnp.ones((batch, 1, seq), jnp.float32)
    tgt_mask = jnp.ones((batch, seq, seq), jnp.float32)

    decoder = Decoder(model_dim, n_layers)
    out = jax.block_until_ready(decoder(x, memory, src_mask, tgt_mask))
    ref = _reference_layernorm(np.asarray(x), np.ones(model_dim), np.zeros(model_dim))
    np.testing.assert_allclose(np.asarray(out), ref, rtol=1e-4, atol=1e-4)

    # Secondary test: non-aligned rows / model_dim exercise the padding paths.
    b2, s2, d2 = 2, 7, 48
    x2 = jax.random.normal(kq, (b2, s2, d2), jnp.float32)
    dec2 = Decoder(d2, 1)
    out2 = jax.block_until_ready(
        dec2(x2, x2, jnp.ones((b2, 1, s2)), jnp.ones((b2, s2, s2))))
    ref2 = _reference_layernorm(np.asarray(x2), np.ones(d2), np.zeros(d2))
    np.testing.assert_allclose(np.asarray(out2), ref2, rtol=1e-4, atol=1e-4)

    print("KERNEL_OK")
</pallas_src>

<mosaic_0001>
module attributes {stable_mosaic.version = 11 : i64} {
  func.func @_layernorm_kernel(%arg0: i32, %arg1: memref<8x128xf32, #tpu.memory_space<vmem>>, %arg2: memref<1x128xf32, #tpu.memory_space<vmem>>, %arg3: memref<1x128xf32, #tpu.memory_space<vmem>>, %arg4: memref<8x128xf32, #tpu.memory_space<vmem>>) attributes {dimension_semantics = [#tpu.dimension_semantics<parallel>], iteration_bounds = array<i64: 2>, scalar_prefetch = 0 : i64, scratch_operands = 0 : i64, tpu.core_type = #tpu.core_type<tc>, window_params = [{transform_indices = @transform_0, window_bounds = array<i64: 8, 128>}, {pipeline_mode = #tpu.pipeline_mode<synchronous>, transform_indices = @transform_1, window_bounds = array<i64: 1, 128>}, {pipeline_mode = #tpu.pipeline_mode<synchronous>, transform_indices = @transform_2, window_bounds = array<i64: 1, 128>}, {transform_indices = @transform_3, window_bounds = array<i64: 8, 128>}]} {
    %c0 = arith.constant 0 : index
    %c0_0 = arith.constant 0 : index
    %0 = vector.load %arg1[%c0, %c0_0] : memref<8x128xf32, #tpu.memory_space<vmem>>, vector<8x128xf32>
    %cst = arith.constant dense<0.000000e+00> : vector<8xf32>
    %1 = vector.multi_reduction <add>, %0, %cst [1] : vector<8x128xf32> to vector<8xf32>
    %2 = vector.shape_cast %1 : vector<8xf32> to vector<8x1xf32>
    %cst_1 = arith.constant 3.125000e-02 : f32
    %3 = vector.broadcast %cst_1 : f32 to vector<8x1xf32>
    %4 = arith.mulf %2, %3 : vector<8x1xf32>
    %5 = vector.broadcast %4 : vector<8x1xf32> to vector<8x128xf32>
    %6 = arith.subf %0, %5 : vector<8x128xf32>
    %7 = tpu.iota {dimensions = array<i32: 1>} : vector<8x128xi32>
    %c32_i32 = arith.constant 32 : i32
    %8 = vector.broadcast %c32_i32 : i32 to vector<8x128xi32>
    %9 = arith.cmpi slt, %7, %8 : vector<8x128xi32>
    %cst_2 = arith.constant 0.000000e+00 : f32
    %10 = vector.broadcast %cst_2 : f32 to vector<8x128xf32>
    %11 = arith.select %9, %6, %10 : vector<8x128xi1>, vector<8x128xf32>
    %12 = arith.mulf %11, %11 : vector<8x128xf32>
    %cst_3 = arith.constant dense<0.000000e+00> : vector<8xf32>
    %13 = vector.multi_reduction <add>, %12, %cst_3 [1] : vector<8x128xf32> to vector<8xf32>
    %14 = vector.shape_cast %13 : vector<8xf32> to vector<8x1xf32>
    %cst_4 = arith.constant 0.0322580636 : f32
    %15 = vector.broadcast %cst_4 : f32 to vector<8x1xf32>
    %16 = arith.mulf %14, %15 : vector<8x1xf32>
    %17 = math.sqrt %16 : vector<8x1xf32>
    %cst_5 = arith.constant 9.99999997E-7 : f32
    %18 = vector.broadcast %cst_5 : f32 to vector<8x1xf32>
    %19 = arith.addf %17, %18 : vector<8x1xf32>
    %20 = tpu.reciprocal %19 {approx = true} : vector<8x1xf32> -> vector<8x1xf32>
    %21 = arith.mulf %19, %20 : vector<8x1xf32>
    %cst_6 = arith.constant 2.000000e+00 : f32
    %22 = vector.broadcast %cst_6 : f32 to vector<8x1xf32>
    %23 = arith.subf %22, %21 : vector<8x1xf32>
    %24 = arith.mulf %20, %23 : vector<8x1xf32>
    %c0_7 = arith.constant 0 : index
    %c0_8 = arith.constant 0 : index
    %25 = vector.load %arg2[%c0_7, %c0_8] : memref<1x128xf32, #tpu.memory_space<vmem>>, vector<1x128xf32>
    %26 = vector.broadcast %2 : vector<8x1xf32> to vector<8x128xf32>
    %27 = arith.subf %0, %26 : vector<8x128xf32>
    %28 = vector.broadcast %24 : vector<8x1xf32> to vector<8x128xf32>
    %29 = arith.mulf %27, %28 : vector<8x128xf32>
    %30 = vector.broadcast %25 : vector<1x128xf32> to vector<8x128xf32>
    %31 = arith.mulf %30, %29 : vector<8x128xf32>
    %c0_9 = arith.constant 0 : index
    %c0_10 = arith.constant 0 : index
    %32 = vector.load %arg3[%c0_9, %c0_10] : memref<1x128xf32, #tpu.memory_space<vmem>>, vector<1x128xf32>
    %33 = vector.broadcast %32 : vector<1x128xf32> to vector<8x128xf32>
    %34 = arith.addf %31, %33 : vector<8x128xf32>
    %c0_11 = arith.constant 0 : index
    %c0_12 = arith.constant 0 : index
    %35 = vector.load %arg4[%c0_11, %c0_12] : memref<8x128xf32, #tpu.memory_space<vmem>>, vector<8x128xf32>
    tpu.vector_store %arg4[%c0_11, %c0_12], %34 {strides = array<i32>} : memref<8x128xf32, #tpu.memory_space<vmem>>, vector<8x128xf32>,
    return
  }
  func.func @transform_0(%arg0: i32) -> (i32, i32) {
    %c0_i32 = arith.constant 0 : i32
    %c0_i32_0 = arith.constant 0 : i32
    return %arg0, %c0_i32 : i32, i32
  }
  func.func @transform_1(%arg0: i32) -> (i32, i32) {
    %c0_i32 = arith.constant 0 : i32
    %c0_i32_0 = arith.constant 0 : i32
    %c0_i32_1 = arith.constant 0 : i32
    return %c0_i32, %c0_i32_0 : i32, i32
  }
  func.func @transform_2(%arg0: i32) -> (i32, i32) {
    %c0_i32 = arith.constant 0 : i32
    %c0_i32_0 = arith.constant 0 : i32
    %c0_i32_1 = arith.constant 0 : i32
    return %c0_i32, %c0_i32_0 : i32, i32
  }
  func.func @transform_3(%arg0: i32) -> (i32, i32) {
    %c0_i32 = arith.constant 0 : i32
    %c0_i32_0 = arith.constant 0 : i32
    return %arg0, %c0_i32 : i32, i32
  }
}

</mosaic_0001>

<bundles_post_ra>
// kernel: tpu_custom_call.1
= control target key start
LH: loop header
LB: loop body
LE: loop exit
PB: predicated region body
PF: predicated region fallthrough
CT: control target
= control target key end

     0   :  { %8 = vsyncpa [#allocation3], 0  ;;  %s717_s0 = inlined_call_operand.hbm [shape: f32[16,128], index: 0, kind: input, shape index: {}]   ;;  %s718_s1 = inlined_call_operand.hbm [shape: f32[1,128], index: 1, kind: input, shape index: {}]   ;;  %s719_s2 = inlined_call_operand.vmem [shape: f32[1,128], index: 2, kind: input, shape index: {}]   ;;  %s720_s3 = inlined_call_operand.hbm [shape: f32[16,128], index: 3, kind: output, shape index: {}]  }
   0x1   :  { %10 = vsyncpa [#allocation3 + $0x1], 0 }
   0x2   :  { %11 = vsyncpa [#allocation6], 0 }
   0x3   :  { %12 = vsyncpa [#allocation4], 0 }
   0x4   :  { %14 = vsyncpa [#allocation4 + $0x1], 0  ;;  %s572_s12 = smov 0   ;;  %s574_s13 = smov 0  }
   0x5   :  { %s576_s14 = smov 0   ;;  %s578_s15 = smov 0  }
   0x6 LB: > { %s593_s16 = sadd.s32 4294967295, %s549_s15   ;;  %s342_s17 = sadd.s32 4294967294, %s549_s15   ;;  %s549_s15 = sphi %s578_s15, %s730_s15   ;;  %s545_s14 = sphi %s576_s14, %s729_s14   ;;  %s541_s13 = sphi %s574_s13, %s728_s13   ;;  %s537_s12 = sphi %s572_s12, %s727_s12  }
   0x7   : > { %p40_p0 = scmp.ne.s32.totalorder %s541_s13, %s537_s12  ;;  %p41_p1 = scmp.eq.s32.totalorder %s593_s16, 0 }
   0x8   : > { %p106_p2 = scmp.eq.s32.totalorder %s593_s16, 1  ;;  %p112_p3 = scmp.eq.s32.totalorder %s342_s17, 1 }
   0x9   : > { %p602_p4 = por %p41_p1, %p40_p0  ;;  %p343_p5 = scmp.ge.s32.totalorder %s549_s15, 1 }
   0xa   : > { %p607_p6 = por %p112_p3, %p40_p0  ;;  %p119_p7 = scmp.lt.s32.totalorder %s549_s15, 3 }
   0xb   : > { %s131_s22 = sshll.u32 %s718_s1, 4  ;;  %s551_s24 = smov [#allocation5]   ;;  %s132_s22 = int_to_ptr.hbm [resolvable:$true] %s131_s22 }
   0xc   : > { %p615_p8 = pnand %p343_p5, %p119_p7  ;;  %s133_s25 = sshll.u32 %s551_s24, 4  ;;  %s134_s25 = int_to_ptr.vmem [resolvable:$true] %s133_s25 }
   0xd   : > { %s625_s26 = sadd.s32 1, %s549_s15   ;;  %s27_s27 = sadd.s32 1, %s545_s14 }
   0xe   : > { %p364_p10 = pneg %p615_p8  ;;  %s24_s28 = ssub.s32 %s549_s15, %s625_s26 }
   0xf   : > { %p25_p12 = scmp.eq.s32.totalorder %s24_s28, 0  ;;  %p34_p13 = scmp.ne.s32.totalorder %s545_s14, %s541_s13 }
  0x10   : > { %p365_p11 = pnand %p364_p10, %p41_p1  ;;  %p35_p0 = scmp.eq.s32.totalorder %s549_s15, 0 }
  0x11   : > { %s634_s29 = scalar_select %p25_p12, %s545_s14, %s27_s27  }
  0x12   : > { %367 = dma.hbm_to_vmem [thread:$0]  (!%p365_p11), %s132_s22, 16, %s134_s25, [#allocation6]  }
  0x13   : > { %p638_p3 = por %p106_p2, %p34_p13  ;;  %p377_p5 = scmp.lt.s32.totalorder %s549_s15, 2 }
  0x14   : > { %s147_s4 = sand.u32 1, %s545_s14   ;;  %s347_s5 = sshll.u32 %s549_s15, 3 }
  0x15   : > { %p36_p7 = por %p35_p0, %p34_p13  ;;  %s346_s6 = sshll.u32 %s147_s4, 3 }
  0x16   : > { %s155_s9 = scalar_lea.hbm %s717_s0, %s347_s5  ;;  %s151_s11 = scalar_lea.vmem [#allocation2], %s346_s6 }
  0x17   : > { %s157_s10 = sshll.u32 %s155_s9, 4  ;;  %s159_s17 = sshll.u32 %s151_s11, 4  ;;  %s158_s10 = int_to_ptr.hbm [resolvable:$true] %s157_s10  ;;  %s160_s17 = int_to_ptr.vmem [resolvable:$true] %s159_s17 }
  0x18   : > { %p648_p10 = pnand %p377_p5, %p36_p7  ;;  %s148_s21 = scalar_lea.sflag [#allocation3], %s147_s4 }
  0x19   : > { %s449_s22 = sshra.s32 %s158_s10, 4  ;;  %s456_s28 = scalar_lea.hbm %s717_s0, 16  ;;  %s450_s22 = int_to_ptr.hbm [resolvable:$true] %s449_s22 }
  0x1a   : > { %s451_s24 = scalar_lea.hbm %s450_s22, 8  ;;  %p453_p11 = pneg %p648_p10 }
  0x1b   : > { %p452_p2 = scmp.ne.s32.totalorder %s450_s22, %s451_s24  ;;  %p457_p0 = scmp.lt.s32.totalorder %s450_s22, %s717_s0 }
  0x1c   : > { %p458_p5 = scmp.lt.s32.totalorder %s456_s28, %s451_s24 }
  0x1d   : > { %p454_p12 = pnand %p453_p11, %p452_p2 }
  0x1e   : > { %p459_p7 = por %p458_p5, %p457_p0 }
  0x1f   : > { %p455_p13 = pneg %p454_p12 }
  0x21   : > { %p460_p9 = pnand %p459_p7, %p455_p13 }
  0x23   : > { %463 = shalt.err (!%p460_p9)
}
  0x24   : > { %371 = dma.hbm_to_vmem [thread:$0]  (!%p648_p10), %s158_s10, 128, %s160_s17, %s148_s21  }
  0x25   : > { %168 = sbr.rel (%p615_p8) target bundleno = 332 (0x14c), region = 32  ;;  %s665_s4 = sand.u32 (!%p615_p8), 1, %s541_s13  }
  0x26   : > { %s349_s7 = sshll.u32 (!%p615_p8), %s665_s4, 3  ;;  %s171_s8 = scalar_lea.sflag (!%p615_p8), [#allocation3], %s665_s4 }
  0x27   : > { %s174_s9 = scalar_lea.vmem (!%p615_p8), [#allocation2], %s349_s7 }
  0x2a   : > { %524 = dma.done.wait (%p602_p4), %s171_s8, 128  }
  0x2b   : > { %526 = vsyncadd (%p602_p4), %s171_s8, 4294967168 }
  0x2c   : > { %528 = dma.done.wait (%p41_p1), [#allocation6], 16  }
  0x2d   : > { %530 = vsyncadd (%p41_p1), [#allocation6], 4294967280  ;;  %v203_v0 = vld [vmem:[%s174_s9] sm:$0xff]  ;;  %v208_v1 = vlaneseq  ;;  %s353_s18 = sshll.u32 %s593_s16, 3  ;;  %v413_v26 = vld [vmem:[#allocation5] ss:$0 sm:$0xff] }
  0x2e   : > { %204 = vadd.xlane.f32.xlu0 %v203_v0  ;;  %s257_s11 = scalar_lea.hbm %s720_s3, %s353_s18  ;;  %v414_v28 = vld [vmem:[%s719_s2] ss:$0 sm:$0xff]  ;;  %s202_s21 = scalar_lea.vmem [#allocation7], %s349_s7 }
  0x2f   : > { %v209_v2 = vand.u32 127, %v208_v1  ;;  %s259_s22 = sshll.u32 %s202_s21, 4  ;;  %s261_s24 = sshll.u32 %s257_s11, 4  ;;  %s260_s22 = int_to_ptr.vmem [resolvable:$true] %s259_s22  ;;  %s262_s24 = int_to_ptr.hbm [resolvable:$true] %s261_s24 }
  0x30   : > { %s247_s16 = scalar_lea.sflag [#allocation4], %s665_s4  ;;  %s493_s25 = sshra.s32 %s262_s24, 4  ;;  %s494_s25 = int_to_ptr.hbm [resolvable:$true] %s493_s25 }
  0x31   : > { %vm210_vm0 = vcmp.lt.s32.totalorder %v209_v2, 32  ;;  %s495_s27 = scalar_lea.hbm %s494_s25, 8  ;;  %s499_s6 = scalar_lea.hbm %s720_s3, 16 }
  0x32   : > { %p496_p1 = scmp.ne.s32.totalorder %s494_s25, %s495_s27  ;;  %p500_p9 = scmp.lt.s32.totalorder %s494_s25, %s720_s3 }
  0x33   : > { %p501_p10 = scmp.lt.s32.totalorder %s499_s6, %s495_s27 }
  0x34   : > { %p497_p4 = pnand %p496_p1, %p638_p3 }
  0x35   : > { %p502_p2 = por %p501_p10, %p500_p9 }
  0x36   : > { %p498_p8 = pneg %p497_p4 }
  0x38   : > { %p503_p11 = pnand %p502_p2, %p498_p8 }
  0xa1   : > { %v205_v3 = vpop.xlane.xlu0 %204 }
  0xa2   : > { %v206_v4 = vmul.f32 0.03125, %v205_v3  ;;  %v234_v24 = vsub.f32 %v203_v0, %v205_v3 }
  0xa4   : > { %v207_v5 = vsub.f32 %v203_v0, %v206_v4 }
  0xa6   : > { %v211_v6 = vsel %vm210_vm0, %v207_v5, 0.0 }
  0xa7   : > { %v212_v7 = vmul.f32 %v211_v6, %v211_v6 }
  0xa9   : > { %213 = vadd.xlane.f32.xlu0 %v212_v7 }
 0x11c   : > { %v214_v8 = vpop.xlane.xlu0 %213 }
 0x11d   : > { %v215_v9 = vmul.f32 0.032258064, %v214_v8 }
 0x11f   : > { %415 = vrsqrt.f32 %v215_v9  ;;  %vm223_vm1 = vcmp.eq.f32.partialorder %v215_v9, inf  ;;  %v226_v17 = vand.u32 2147483648, %v215_v9  ;;  %vm225_vm2 = vcmp.eq.f32.partialorder %v215_v9, 0.0 }
 0x125   : > { %v416_v10 = vpop.eup %415 }
 0x126   : > { %v217_v11 = vmul.f32 %v416_v10, %v215_v9 }
 0x128   : > { %v218_v12 = vmul.f32 %v416_v10, %v217_v11 }
 0x12a   : > { %v219_v13 = vmul.f32 0.5, %v218_v12 }
 0x12c   : > { %v220_v14 = vsub.f32 1.5, %v219_v13 }
 0x12e   : > { %v221_v15 = vmul.f32 %v416_v10, %v220_v14 }
 0x130   : > { %v222_v16 = vmul.f32 %v221_v15, %v215_v9 }
 0x132   : > { %v224_v18 = vsel %vm223_vm1, %v215_v9, %v222_v16 }
 0x133   : > { %v227_v19 = vsel %vm225_vm2, %v226_v17, %v224_v18 }
 0x134   : > { %v228_v20 = vadd.f32 1e-06, %v227_v19 }
 0x136   : > { %417 = vrcp.f32 %v228_v20 }
 0x13c   : > { %v418_v21 = vpop.eup %417 }
 0x13d   : > { %v230_v22 = vmul.f32 %v418_v21, %v228_v20 }
 0x13f   : > { %v231_v23 = vsub.f32 2.0, %v230_v22 }
 0x141   : > { %v232_v25 = vmul.f32 %v418_v21, %v231_v23 }
 0x143   : > { %v235_v27 = vmul.f32 %v234_v24, %v232_v25 }
 0x145   : > { %v239_v29 = vmul.f32 %v413_v26, %v235_v27 }
 0x147   : > { %v244_v30 = vadd.f32 %v414_v28, %v239_v29 }
 0x149   : > { %245 = vst [vmem:[%s202_s21] sm:$0xff] %v244_v30 }
 0x14a   : > { %506 = shalt.err (!%p503_p11)
}
 0x14b   : > { %362 = dma.vmem_to_hbm [thread:$0]  (%p638_p3), %s260_s22, 128, %s262_s24, %s247_s16  }
 0x14c PF: > { %s273_s4 = sand.u32 1, %s537_s12   ;;  %p726_p12 = scmp.ge.s32.totalorder %s549_s15, 2 }
 0x14d   : > { %s274_s9 = scalar_lea.sflag [#allocation4], %s273_s4 }
 0x14e   : > { %p373_p13 = pnand %p726_p12, %p607_p6 }
 0x150   : > { %p374_p0 = pneg %p373_p13 }
 0x152   : > { %532 = dma.done.wait (%p374_p0), %s274_s9, 128  }
 0x153   : > { %534 = vsyncadd (%p374_p0), %s274_s9, 4294967168  ;;  %p17_p5 = scmp.ge.s32.totalorder %s625_s26, 4   ;;  %s727_s12 = smov %s541_s13 }
 0x154   : > { %s728_s13 = smov %s545_s14  ;;  %s729_s14 = smov %s634_s29 }
 0x155   : > { %s730_s15 = smov %s625_s26  ;;  %19 = sbr.rel (!%p17_p5) target bundleno = 6 (0x6), region = 81 }
 0x15a   :  { %280 = vsyncpa [#allocation3], 1 }
 0x15b   :  { %282 = vsyncpa [#allocation3 + $0x1], 1 }
 0x15c   :  { %283 = vsyncpa [#allocation6], 1 }
 0x15d   :  { %284 = vsyncpa [#allocation4], 1 }
 0x15e   :  { %286 = vsyncpa [#allocation4 + $0x1], 1 }

</bundles_post_ra>
